<compile_context>
chip_gen: v7x
topology: tpu7x:2x2x1
jax: 0.10.0
libtpu: 0.0.40
codegen_flags: <defaults>
</compile_context>

<pallas_src>
import jax
import jax.numpy as jnp
import numpy as np
from jax.experimental import pallas as pl
from jax.experimental.pallas import tpu as pltpu

# ---- model dims (small, consistent with the module) -------------------------
N_CLASS = 32      # vocab size
EMB_SIZE = 16
HIDDEN_SIZE = 32
BATCH = 2
SEQ_LEN = 8


# ---- Pallas kernel: fused (one-hot) embedding+input projection, GRU, Linear -
def gru_lm_kernel(
    tok_ref,                       # (S*B, 1) int32, time-major (row t*B + b)
    ewi_rz_ref,                    # (N_CLASS, 2H)  emb @ [W_ir | W_iz]
    ewi_n_ref,                     # (N_CLASS, H)   emb @ W_in
    wh_rz_ref,                     # (H, 2H)        [W_hr | W_hz]
    wh_n_ref,                      # (H, H)         W_hn
    bi_rz_ref,                     # (1, 2H)        [b_ir+b_hr | b_iz+b_hz]
    bi_n_ref,                      # (1, H)         b_in
    bhn_ref,                       # (1, H)         b_hn
    wout_ref,                      # (H, n_class)
    bout_ref,                      # (1, n_class)
    pred_ref,                      # out: (B, n_class)
):
    H = HIDDEN_SIZE
    B = BATCH
    S = SEQ_LEN

    # --- prologue: fused embedding lookup + input projection -----------------
    # one-hot(tokens) @ (emb @ W_i)  ==  emb[tokens] @ W_i  (exact row select).
    tok = tok_ref[...]                                            # (S*B, 1)
    onehot = (
        jax.lax.broadcasted_iota(jnp.int32, (S * B, N_CLASS), 1) == tok
    ).astype(jnp.float32)                                         # (S*B, N_CLASS)

    x_rz = (
        jnp.dot(onehot, ewi_rz_ref[...], preferred_element_type=jnp.float32)
        + bi_rz_ref[...]
    )                                                             # (S*B, 2H)
    x_n = (
        jnp.dot(onehot, ewi_n_ref[...], preferred_element_type=jnp.float32)
        + bi_n_ref[...]
    )                                                             # (S*B, H)

    # Pre-extract per-step slices so the sublane selects sit in the prologue,
    # not interleaved with the serial h-dependency.
    xp_rz = [x_rz[t * B:(t + 1) * B, :] for t in range(S)]        # each (B, 2H)
    xp_n = [x_n[t * B:(t + 1) * B, :] for t in range(S)]          # each (B, H)

    wh_rz = wh_rz_ref[...]                                        # hoisted loads
    wh_n = wh_n_ref[...]
    bhn_b = jnp.broadcast_to(bhn_ref[...], (B, H))                # hoisted bcast

    # --- recurrence: statically unrolled, h carried in vregs -----------------
    h = jnp.zeros((B, H), jnp.float32)
    for t in range(S):
        hp_rz = jnp.dot(h, wh_rz, preferred_element_type=jnp.float32)  # (B,2H)
        hp_n = jnp.dot(h, wh_n, preferred_element_type=jnp.float32)    # (B, H)
        rz = jax.nn.sigmoid(xp_rz[t] + hp_rz)                          # (B,2H)
        r = rz[:, :H]                                             # lane offset 0
        z = rz[:, H:]
        # PyTorch GRU: n = tanh(x W_in + b_in + r * (h W_hn + b_hn))
        n = jnp.tanh(xp_n[t] + r * (hp_n + bhn_b))
        h = (1.0 - z) * n + z * h

    # hidden/output dropout = identity (eval).  Project outputs[-1] only.
    pred_ref[...] = (
        jnp.dot(h, wout_ref[...], preferred_element_type=jnp.float32)
        + bout_ref[...]
    )


def text_rnn_forward(tokens, packed):
    """tokens: (B, S) int32.  Returns prediction (B, n_class) float32."""
    B, S = tokens.shape
    H = HIDDEN_SIZE

    # time-major token ids: row t*B + b  <->  tokens[b, t]
    tokens_tm = tokens.astype(jnp.int32).T.reshape(S * B, 1)

    def full(shape):
        return pl.BlockSpec(shape, lambda i, _shape=shape: tuple(0 for _ in _shape))

    grid_spec = pltpu.PrefetchScalarGridSpec(
        num_scalar_prefetch=0,
        grid=(1,),                                 # whole sequence, one invocation
        in_specs=[
            full((S * B, 1)),                      # tokens (time-major)
            full((N_CLASS, 2 * H)),                # emb @ [W_ir | W_iz]
            full((N_CLASS, H)),                    # emb @ W_in
            full((H, 2 * H)),                      # [W_hr | W_hz]
            full((H, H)),                          # W_hn
            full((1, 2 * H)),                      # [b_ir+b_hr | b_iz+b_hz]
            full((1, H)),                          # b_in
            full((1, H)),                          # b_hn
            full((H, N_CLASS)),                    # W_out
            full((1, N_CLASS)),                    # b_out
        ],
        out_specs=pl.BlockSpec((B, N_CLASS), lambda i: (0, 0)),
    )

    return pl.pallas_call(
        gru_lm_kernel,
        out_shape=jax.ShapeDtypeStruct((B, N_CLASS), jnp.float32),
        grid_spec=grid_spec,
        compiler_params=pltpu.CompilerParams(
            dimension_semantics=("arbitrary",),
        ),
    )(
        tokens_tm,
        packed["emb_wi_rz"], packed["emb_wi_n"],
        packed["wh_rz"], packed["wh_n"],
        packed["bi_rz"], packed["bi_n"], packed["bhn"],
        packed["wout"], packed["bout"],
    )


# ---- parameter packing (done once, outside the kernel) -----------------------
def pack_params(p):
    H = HIDDEN_SIZE
    wi = jnp.concatenate([p["wir"], p["wiz"], p["win"]], axis=1)       # (E, 3H)
    emb_wi = jnp.dot(p["emb"], wi)                                     # (N_CLASS, 3H)
    return {
        "emb_wi_rz": emb_wi[:, :2 * H],                                # (N_CLASS, 2H)
        "emb_wi_n": emb_wi[:, 2 * H:],                                 # (N_CLASS, H)
        "wh_rz": jnp.concatenate([p["whr"], p["whz"]], axis=1),        # (H, 2H)
        "wh_n": p["whn"],                                              # (H, H)
        "bi_rz": jnp.concatenate(
            [p["bir"] + p["bhr"], p["biz"] + p["bhz"]], axis=1),       # (1, 2H)
        "bi_n": p["bin"],                                              # (1, H)
        "bhn": p["bhn"],                                               # (1, H)
        "wout": p["wout"],
        "bout": p["bout"],
    }


# ---- pure-JAX reference (mirrors torch semantics, unpacked params) ----------
def reference_forward(tokens, params):
    emb = params["emb"]
    x = jnp.take(emb, tokens, axis=0)
    x = jnp.transpose(x, (1, 0, 2)).astype(jnp.float32)   # (S, B, E)
    h = jnp.zeros((tokens.shape[0], HIDDEN_SIZE), jnp.float32)
    for t in range(x.shape[0]):
        xt = x[t]
        r = jax.nn.sigmoid(xt @ params["wir"] + params["bir"]
                           + h @ params["whr"] + params["bhr"])
        z = jax.nn.sigmoid(xt @ params["wiz"] + params["biz"]
                           + h @ params["whz"] + params["bhz"])
        n = jnp.tanh(xt @ params["win"] + params["bin"]
                     + r * (h @ params["whn"] + params["bhn"]))
        h = (1.0 - z) * n + z * h
    return h @ params["wout"] + params["bout"]


def init_params(key):
    ks = jax.random.split(key, 16)
    s = 0.1

    def mk(k, shape):
        return (s * jax.random.normal(k, shape)).astype(jnp.float32)

    emb = mk(ks[0], (N_CLASS, EMB_SIZE))
    emb = emb.at[0].set(0.0)                        # padding_idx=0
    return {
        "emb": emb,
        "wir": mk(ks[1], (EMB_SIZE, HIDDEN_SIZE)),
        "wiz": mk(ks[2], (EMB_SIZE, HIDDEN_SIZE)),
        "win": mk(ks[3], (EMB_SIZE, HIDDEN_SIZE)),
        "whr": mk(ks[4], (HIDDEN_SIZE, HIDDEN_SIZE)),
        "whz": mk(ks[5], (HIDDEN_SIZE, HIDDEN_SIZE)),
        "whn": mk(ks[6], (HIDDEN_SIZE, HIDDEN_SIZE)),
        "bir": mk(ks[7], (1, HIDDEN_SIZE)),
        "biz": mk(ks[8], (1, HIDDEN_SIZE)),
        "bin": mk(ks[9], (1, HIDDEN_SIZE)),
        "bhr": mk(ks[10], (1, HIDDEN_SIZE)),
        "bhz": mk(ks[11], (1, HIDDEN_SIZE)),
        "bhn": mk(ks[12], (1, HIDDEN_SIZE)),
        "wout": mk(ks[13], (HIDDEN_SIZE, N_CLASS)),
        "bout": mk(ks[14], (1, N_CLASS)),
    }


if __name__ == "__main__":
    key = jax.random.PRNGKey(0)
    params = init_params(key)
    packed = pack_params(params)
    tokens = jax.random.randint(
        jax.random.fold_in(key, 1), (BATCH, SEQ_LEN), 0, N_CLASS, dtype=jnp.int32
    )

    pred = text_rnn_forward(tokens, packed)
    pred = jax.block_until_ready(pred)

    ref = reference_forward(tokens, params)
    np.testing.assert_allclose(np.asarray(pred), np.asarray(ref),
                               rtol=1e-5, atol=1e-5)
    print("KERNEL_OK")
</pallas_src>

<mosaic_0001>
module attributes {stable_mosaic.version = 11 : i64} {
  func.func @gru_lm_kernel(%arg0: i32, %arg1: memref<16x1xi32, #tpu.memory_space<vmem>>, %arg2: memref<32x64xf32, #tpu.memory_space<vmem>>, %arg3: memref<32x32xf32, #tpu.memory_space<vmem>>, %arg4: memref<32x64xf32, #tpu.memory_space<vmem>>, %arg5: memref<32x32xf32, #tpu.memory_space<vmem>>, %arg6: memref<1x64xf32, #tpu.memory_space<vmem>>, %arg7: memref<1x32xf32, #tpu.memory_space<vmem>>, %arg8: memref<1x32xf32, #tpu.memory_space<vmem>>, %arg9: memref<32x32xf32, #tpu.memory_space<vmem>>, %arg10: memref<1x32xf32, #tpu.memory_space<vmem>>, %arg11: memref<2x32xf32, #tpu.memory_space<vmem>>) attributes {dimension_semantics = [#tpu.dimension_semantics<arbitrary>], iteration_bounds = array<i64: 1>, scalar_prefetch = 0 : i64, scratch_operands = 0 : i64, tpu.core_type = #tpu.core_type<tc>, window_params = [{pipeline_mode = #tpu.pipeline_mode<synchronous>, transform_indices = @transform_0, window_bounds = array<i64: 16, 1>}, {pipeline_mode = #tpu.pipeline_mode<synchronous>, transform_indices = @transform_1, window_bounds = array<i64: 32, 64>}, {pipeline_mode = #tpu.pipeline_mode<synchronous>, transform_indices = @transform_2, window_bounds = array<i64: 32, 32>}, {pipeline_mode = #tpu.pipeline_mode<synchronous>, transform_indices = @transform_3, window_bounds = array<i64: 32, 64>}, {pipeline_mode = #tpu.pipeline_mode<synchronous>, transform_indices = @transform_4, window_bounds = array<i64: 32, 32>}, {pipeline_mode = #tpu.pipeline_mode<synchronous>, transform_indices = @transform_5, window_bounds = array<i64: 1, 64>}, {pipeline_mode = #tpu.pipeline_mode<synchronous>, transform_indices = @transform_6, window_bounds = array<i64: 1, 32>}, {pipeline_mode = #tpu.pipeline_mode<synchronous>, transform_indices = @transform_7, window_bounds = array<i64: 1, 32>}, {pipeline_mode = #tpu.pipeline_mode<synchronous>, transform_indices = @transform_8, window_bounds = array<i64: 32, 32>}, {pipeline_mode = #tpu.pipeline_mode<synchronous>, transform_indices = @transform_9, window_bounds = array<i64: 1, 32>}, {pipeline_mode = #tpu.pipeline_mode<synchronous>, transform_indices = @transform_10, window_bounds = array<i64: 2, 32>}]} {
    %c0 = arith.constant 0 : index
    %c0_0 = arith.constant 0 : index
    %0 = vector.load %arg1[%c0, %c0_0] : memref<16x1xi32, #tpu.memory_space<vmem>>, vector<16x1xi32>
    %1 = tpu.iota {dimensions = array<i32: 1>} : vector<16x32xi32>
    %2 = vector.broadcast %0 : vector<16x1xi32> to vector<16x32xi32>
    %3 = arith.cmpi eq, %1, %2 : vector<16x32xi32>
    %4 = arith.extui %3 : vector<16x32xi1> to vector<16x32xi32>
    %5 = arith.sitofp %4 : vector<16x32xi32> to vector<16x32xf32>
    %c0_1 = arith.constant 0 : index
    %c0_2 = arith.constant 0 : index
    %6 = vector.load %arg2[%c0_1, %c0_2] : memref<32x64xf32, #tpu.memory_space<vmem>>, vector<32x64xf32>
    %cst = arith.constant dense<0.000000e+00> : vector<16x64xf32>
    %7 = tpu.matmul %5, %6, %cst {dimension_numbers = #tpu.dot_dimension_numbers<[1], [0], [0], [1], [0, 0, 1, 1], [], []>} : vector<16x32xf32>, vector<32x64xf32>, vector<16x64xf32> -> vector<16x64xf32>
    %c0_3 = arith.constant 0 : index
    %c0_4 = arith.constant 0 : index
    %8 = vector.load %arg6[%c0_3, %c0_4] : memref<1x64xf32, #tpu.memory_space<vmem>>, vector<1x64xf32>
    %9 = vector.broadcast %8 : vector<1x64xf32> to vector<16x64xf32>
    %10 = arith.addf %7, %9 : vector<16x64xf32>
    %c0_5 = arith.constant 0 : index
    %c0_6 = arith.constant 0 : index
    %11 = vector.load %arg3[%c0_5, %c0_6] : memref<32x32xf32, #tpu.memory_space<vmem>>, vector<32x32xf32>
    %cst_7 = arith.constant dense<0.000000e+00> : vector<16x32xf32>
    %12 = tpu.matmul %5, %11, %cst_7 {dimension_numbers = #tpu.dot_dimension_numbers<[1], [0], [0], [1], [0, 0, 1, 1], [], []>} : vector<16x32xf32>, vector<32x32xf32>, vector<16x32xf32> -> vector<16x32xf32>
    %c0_8 = arith.constant 0 : index
    %c0_9 = arith.constant 0 : index
    %13 = vector.load %arg7[%c0_8, %c0_9] : memref<1x32xf32, #tpu.memory_space<vmem>>, vector<1x32xf32>
    %14 = vector.broadcast %13 : vector<1x32xf32> to vector<16x32xf32>
    %15 = arith.addf %12, %14 : vector<16x32xf32>
    %16 = vector.extract_strided_slice %10 {offsets = [0, 0], sizes = [2, 64], strides = [1, 1]} : vector<16x64xf32> to vector<2x64xf32>
    %17 = vector.extract_strided_slice %10 {offsets = [2, 0], sizes = [2, 64], strides = [1, 1]} : vector<16x64xf32> to vector<2x64xf32>
    %18 = vector.extract_strided_slice %10 {offsets = [4, 0], sizes = [2, 64], strides = [1, 1]} : vector<16x64xf32> to vector<2x64xf32>
    %19 = vector.extract_strided_slice %10 {offsets = [6, 0], sizes = [2, 64], strides = [1, 1]} : vector<16x64xf32> to vector<2x64xf32>
    %20 = vector.extract_strided_slice %10 {offsets = [8, 0], sizes = [2, 64], strides = [1, 1]} : vector<16x64xf32> to vector<2x64xf32>
    %21 = vector.extract_strided_slice %10 {offsets = [10, 0], sizes = [2, 64], strides = [1, 1]} : vector<16x64xf32> to vector<2x64xf32>
    %22 = vector.extract_strided_slice %10 {offsets = [12, 0], sizes = [2, 64], strides = [1, 1]} : vector<16x64xf32> to vector<2x64xf32>
    %23 = vector.extract_strided_slice %10 {offsets = [14, 0], sizes = [2, 64], strides = [1, 1]} : vector<16x64xf32> to vector<2x64xf32>
    %24 = vector.extract_strided_slice %15 {offsets = [0, 0], sizes = [2, 32], strides = [1, 1]} : vector<16x32xf32> to vector<2x32xf32>
    %25 = vector.extract_strided_slice %15 {offsets = [2, 0], sizes = [2, 32], strides = [1, 1]} : vector<16x32xf32> to vector<2x32xf32>
    %26 = vector.extract_strided_slice %15 {offsets = [4, 0], sizes = [2, 32], strides = [1, 1]} : vector<16x32xf32> to vector<2x32xf32>
    %27 = vector.extract_strided_slice %15 {offsets = [6, 0], sizes = [2, 32], strides = [1, 1]} : vector<16x32xf32> to vector<2x32xf32>
    %28 = vector.extract_strided_slice %15 {offsets = [8, 0], sizes = [2, 32], strides = [1, 1]} : vector<16x32xf32> to vector<2x32xf32>
    %29 = vector.extract_strided_slice %15 {offsets = [10, 0], sizes = [2, 32], strides = [1, 1]} : vector<16x32xf32> to vector<2x32xf32>
    %30 = vector.extract_strided_slice %15 {offsets = [12, 0], sizes = [2, 32], strides = [1, 1]} : vector<16x32xf32> to vector<2x32xf32>
    %31 = vector.extract_strided_slice %15 {offsets = [14, 0], sizes = [2, 32], strides = [1, 1]} : vector<16x32xf32> to vector<2x32xf32>
    %c0_10 = arith.constant 0 : index
    %c0_11 = arith.constant 0 : index
    %32 = vector.load %arg4[%c0_10, %c0_11] : memref<32x64xf32, #tpu.memory_space<vmem>>, vector<32x64xf32>
    %c0_12 = arith.constant 0 : index
    %c0_13 = arith.constant 0 : index
    %33 = vector.load %arg5[%c0_12, %c0_13] : memref<32x32xf32, #tpu.memory_space<vmem>>, vector<32x32xf32>
    %c0_14 = arith.constant 0 : index
    %c0_15 = arith.constant 0 : index
    %34 = vector.load %arg8[%c0_14, %c0_15] : memref<1x32xf32, #tpu.memory_space<vmem>>, vector<1x32xf32>
    %35 = vector.shape_cast %34 : vector<1x32xf32> to vector<1x32xf32>
    %36 = vector.broadcast %35 : vector<1x32xf32> to vector<2x32xf32>
    %cst_16 = arith.constant 0.000000e+00 : f32
    %37 = vector.broadcast %cst_16 : f32 to vector<2x32xf32>
    %cst_17 = arith.constant dense<0.000000e+00> : vector<2x64xf32>
    %38 = tpu.matmul %37, %32, %cst_17 {dimension_numbers = #tpu.dot_dimension_numbers<[1], [0], [0], [1], [0, 0, 1, 1], [], []>} : vector<2x32xf32>, vector<32x64xf32>, vector<2x64xf32> -> vector<2x64xf32>
    %cst_18 = arith.constant dense<0.000000e+00> : vector<2x32xf32>
    %39 = tpu.matmul %37, %33, %cst_18 {dimension_numbers = #tpu.dot_dimension_numbers<[1], [0], [0], [1], [0, 0, 1, 1], [], []>} : vector<2x32xf32>, vector<32x32xf32>, vector<2x32xf32> -> vector<2x32xf32>
    %40 = arith.addf %16, %38 : vector<2x64xf32>
    %41 = arith.negf %40 : vector<2x64xf32>
    %42 = math.exp %41 : vector<2x64xf32>
    %cst_19 = arith.constant 1.000000e+00 : f32
    %43 = vector.broadcast %cst_19 : f32 to vector<2x64xf32>
    %44 = arith.addf %43, %42 : vector<2x64xf32>
    %45 = arith.divf %43, %44 : vector<2x64xf32>
    %46 = vector.extract_strided_slice %45 {offsets = [0, 0], sizes = [2, 32], strides = [1, 1]} : vector<2x64xf32> to vector<2x32xf32>
    %47 = vector.extract_strided_slice %45 {offsets = [0, 32], sizes = [2, 32], strides = [1, 1]} : vector<2x64xf32> to vector<2x32xf32>
    %48 = arith.addf %39, %36 : vector<2x32xf32>
    %49 = arith.mulf %46, %48 : vector<2x32xf32>
    %50 = arith.addf %24, %49 : vector<2x32xf32>
    %51 = math.tanh %50 : vector<2x32xf32>
    %cst_20 = arith.constant 1.000000e+00 : f32
    %52 = vector.broadcast %cst_20 : f32 to vector<2x32xf32>
    %53 = arith.subf %52, %47 : vector<2x32xf32>
    %54 = arith.mulf %53, %51 : vector<2x32xf32>
    %55 = arith.mulf %47, %37 : vector<2x32xf32>
    %56 = arith.addf %54, %55 : vector<2x32xf32>
    %cst_21 = arith.constant dense<0.000000e+00> : vector<2x64xf32>
    %57 = tpu.matmul %56, %32, %cst_21 {dimension_numbers = #tpu.dot_dimension_numbers<[1], [0], [0], [1], [0, 0, 1, 1], [], []>} : vector<2x32xf32>, vector<32x64xf32>, vector<2x64xf32> -> vector<2x64xf32>
    %cst_22 = arith.constant dense<0.000000e+00> : vector<2x32xf32>
    %58 = tpu.matmul %56, %33, %cst_22 {dimension_numbers = #tpu.dot_dimension_numbers<[1], [0], [0], [1], [0, 0, 1, 1], [], []>} : vector<2x32xf32>, vector<32x32xf32>, vector<2x32xf32> -> vector<2x32xf32>
    %59 = arith.addf %17, %57 : vector<2x64xf32>
    %60 = arith.negf %59 : vector<2x64xf32>
    %61 = math.exp %60 : vector<2x64xf32>
    %cst_23 = arith.constant 1.000000e+00 : f32
    %62 = vector.broadcast %cst_23 : f32 to vector<2x64xf32>
    %63 = arith.addf %62, %61 : vector<2x64xf32>
    %64 = arith.divf %62, %63 : vector<2x64xf32>
    %65 = vector.extract_strided_slice %64 {offsets = [0, 0], sizes = [2, 32], strides = [1, 1]} : vector<2x64xf32> to vector<2x32xf32>
    %66 = vector.extract_strided_slice %64 {offsets = [0, 32], sizes = [2, 32], strides = [1, 1]} : vector<2x64xf32> to vector<2x32xf32>
    %67 = arith.addf %58, %36 : vector<2x32xf32>
    %68 = arith.mulf %65, %67 : vector<2x32xf32>
    %69 = arith.addf %25, %68 : vector<2x32xf32>
    %70 = math.tanh %69 : vector<2x32xf32>
    %cst_24 = arith.constant 1.000000e+00 : f32
    %71 = vector.broadcast %cst_24 : f32 to vector<2x32xf32>
    %72 = arith.subf %71, %66 : vector<2x32xf32>
    %73 = arith.mulf %72, %70 : vector<2x32xf32>
    %74 = arith.mulf %66, %56 : vector<2x32xf32>
    %75 = arith.addf %73, %74 : vector<2x32xf32>
    %cst_25 = arith.constant dense<0.000000e+00> : vector<2x64xf32>
    %76 = tpu.matmul %75, %32, %cst_25 {dimension_numbers = #tpu.dot_dimension_numbers<[1], [0], [0], [1], [0, 0, 1, 1], [], []>} : vector<2x32xf32>, vector<32x64xf32>, vector<2x64xf32> -> vector<2x64xf32>
    %cst_26 = arith.constant dense<0.000000e+00> : vector<2x32xf32>
    %77 = tpu.matmul %75, %33, %cst_26 {dimension_numbers = #tpu.dot_dimension_numbers<[1], [0], [0], [1], [0, 0, 1, 1], [], []>} : vector<2x32xf32>, vector<32x32xf32>, vector<2x32xf32> -> vector<2x32xf32>
    %78 = arith.addf %18, %76 : vector<2x64xf32>
    %79 = arith.negf %78 : vector<2x64xf32>
    %80 = math.exp %79 : vector<2x64xf32>
    %cst_27 = arith.constant 1.000000e+00 : f32
    %81 = vector.broadcast %cst_27 : f32 to vector<2x64xf32>
    %82 = arith.addf %81, %80 : vector<2x64xf32>
    %83 = arith.divf %81, %82 : vector<2x64xf32>
    %84 = vector.extract_strided_slice %83 {offsets = [0, 0], sizes = [2, 32], strides = [1, 1]} : vector<2x64xf32> to vector<2x32xf32>
    %85 = vector.extract_strided_slice %83 {offsets = [0, 32], sizes = [2, 32], strides = [1, 1]} : vector<2x64xf32> to vector<2x32xf32>
    %86 = arith.addf %77, %36 : vector<2x32xf32>
    %87 = arith.mulf %84, %86 : vector<2x32xf32>
    %88 = arith.addf %26, %87 : vector<2x32xf32>
    %89 = math.tanh %88 : vector<2x32xf32>
    %cst_28 = arith.constant 1.000000e+00 : f32
    %90 = vector.broadcast %cst_28 : f32 to vector<2x32xf32>
    %91 = arith.subf %90, %85 : vector<2x32xf32>
    %92 = arith.mulf %91, %89 : vector<2x32xf32>
    %93 = arith.mulf %85, %75 : vector<2x32xf32>
    %94 = arith.addf %92, %93 : vector<2x32xf32>
    %cst_29 = arith.constant dense<0.000000e+00> : vector<2x64xf32>
    %95 = tpu.matmul %94, %32, %cst_29 {dimension_numbers = #tpu.dot_dimension_numbers<[1], [0], [0], [1], [0, 0, 1, 1], [], []>} : vector<2x32xf32>, vector<32x64xf32>, vector<2x64xf32> -> vector<2x64xf32>
    %cst_30 = arith.constant dense<0.000000e+00> : vector<2x32xf32>
    %96 = tpu.matmul %94, %33, %cst_30 {dimension_numbers = #tpu.dot_dimension_numbers<[1], [0], [0], [1], [0, 0, 1, 1], [], []>} : vector<2x32xf32>, vector<32x32xf32>, vector<2x32xf32> -> vector<2x32xf32>
    %97 = arith.addf %19, %95 : vector<2x64xf32>
    %98 = arith.negf %97 : vector<2x64xf32>
    %99 = math.exp %98 : vector<2x64xf32>
    %cst_31 = arith.constant 1.000000e+00 : f32
    %100 = vector.broadcast %cst_31 : f32 to vector<2x64xf32>
    %101 = arith.addf %100, %99 : vector<2x64xf32>
    %102 = arith.divf %100, %101 : vector<2x64xf32>
    %103 = vector.extract_strided_slice %102 {offsets = [0, 0], sizes = [2, 32], strides = [1, 1]} : vector<2x64xf32> to vector<2x32xf32>
    %104 = vector.extract_strided_slice %102 {offsets = [0, 32], sizes = [2, 32], strides = [1, 1]} : vector<2x64xf32> to vector<2x32xf32>
    %105 = arith.addf %96, %36 : vector<2x32xf32>
    %106 = arith.mulf %103, %105 : vector<2x32xf32>
    %107 = arith.addf %27, %106 : vector<2x32xf32>
    %108 = math.tanh %107 : vector<2x32xf32>
    %cst_32 = arith.constant 1.000000e+00 : f32
    %109 = vector.broadcast %cst_32 : f32 to vector<2x32xf32>
    %110 = arith.subf %109, %104 : vector<2x32xf32>
    %111 = arith.mulf %110, %108 : vector<2x32xf32>
    %112 = arith.mulf %104, %94 : vector<2x32xf32>
    %113 = arith.addf %111, %112 : vector<2x32xf32>
    %cst_33 = arith.constant dense<0.000000e+00> : vector<2x64xf32>
    %114 = tpu.matmul %113, %32, %cst_33 {dimension_numbers = #tpu.dot_dimension_numbers<[1], [0], [0], [1], [0, 0, 1, 1], [], []>} : vector<2x32xf32>, vector<32x64xf32>, vector<2x64xf32> -> vector<2x64xf32>
    %cst_34 = arith.constant dense<0.000000e+00> : vector<2x32xf32>
    %115 = tpu.matmul %113, %33, %cst_34 {dimension_numbers = #tpu.dot_dimension_numbers<[1], [0], [0], [1], [0, 0, 1, 1], [], []>} : vector<2x32xf32>, vector<32x32xf32>, vector<2x32xf32> -> vector<2x32xf32>
    %116 = arith.addf %20, %114 : vector<2x64xf32>
    %117 = arith.negf %116 : vector<2x64xf32>
    %118 = math.exp %117 : vector<2x64xf32>
    %cst_35 = arith.constant 1.000000e+00 : f32
    %119 = vector.broadcast %cst_35 : f32 to vector<2x64xf32>
    %120 = arith.addf %119, %118 : vector<2x64xf32>
    %121 = arith.divf %119, %120 : vector<2x64xf32>
    %122 = vector.extract_strided_slice %121 {offsets = [0, 0], sizes = [2, 32], strides = [1, 1]} : vector<2x64xf32> to vector<2x32xf32>
    %123 = vector.extract_strided_slice %121 {offsets = [0, 32], sizes = [2, 32], strides = [1, 1]} : vector<2x64xf32> to vector<2x32xf32>
    %124 = arith.addf %115, %36 : vector<2x32xf32>
    %125 = arith.mulf %122, %124 : vector<2x32xf32>
    %126 = arith.addf %28, %125 : vector<2x32xf32>
    %127 = math.tanh %126 : vector<2x32xf32>
    %cst_36 = arith.constant 1.000000e+00 : f32
    %128 = vector.broadcast %cst_36 : f32 to vector<2x32xf32>
    %129 = arith.subf %128, %123 : vector<2x32xf32>
    %130 = arith.mulf %129, %127 : vector<2x32xf32>
    %131 = arith.mulf %123, %113 : vector<2x32xf32>
    %132 = arith.addf %130, %131 : vector<2x32xf32>
    %cst_37 = arith.constant dense<0.000000e+00> : vector<2x64xf32>
    %133 = tpu.matmul %132, %32, %cst_37 {dimension_numbers = #tpu.dot_dimension_numbers<[1], [0], [0], [1], [0, 0, 1, 1], [], []>} : vector<2x32xf32>, vector<32x64xf32>, vector<2x64xf32> -> vector<2x64xf32>
    %cst_38 = arith.constant dense<0.000000e+00> : vector<2x32xf32>
    %134 = tpu.matmul %132, %33, %cst_38 {dimension_numbers = #tpu.dot_dimension_numbers<[1], [0], [0], [1], [0, 0, 1, 1], [], []>} : vector<2x32xf32>, vector<32x32xf32>, vector<2x32xf32> -> vector<2x32xf32>
    %135 = arith.addf %21, %133 : vector<2x64xf32>
    %136 = arith.negf %135 : vector<2x64xf32>
    %137 = math.exp %136 : vector<2x64xf32>
    %cst_39 = arith.constant 1.000000e+00 : f32
    %138 = vector.broadcast %cst_39 : f32 to vector<2x64xf32>
    %139 = arith.addf %138, %137 : vector<2x64xf32>
    %140 = arith.divf %138, %139 : vector<2x64xf32>
    %141 = vector.extract_strided_slice %140 {offsets = [0, 0], sizes = [2, 32], strides = [1, 1]} : vector<2x64xf32> to vector<2x32xf32>
    %142 = vector.extract_strided_slice %140 {offsets = [0, 32], sizes = [2, 32], strides = [1, 1]} : vector<2x64xf32> to vector<2x32xf32>
    %143 = arith.addf %134, %36 : vector<2x32xf32>
    %144 = arith.mulf %141, %143 : vector<2x32xf32>
    %145 = arith.addf %29, %144 : vector<2x32xf32>
    %146 = math.tanh %145 : vector<2x32xf32>
    %cst_40 = arith.constant 1.000000e+00 : f32
    %147 = vector.broadcast %cst_40 : f32 to vector<2x32xf32>
    %148 = arith.subf %147, %142 : vector<2x32xf32>
    %149 = arith.mulf %148, %146 : vector<2x32xf32>
    %150 = arith.mulf %142, %132 : vector<2x32xf32>
    %151 = arith.addf %149, %150 : vector<2x32xf32>
    %cst_41 = arith.constant dense<0.000000e+00> : vector<2x64xf32>
    %152 = tpu.matmul %151, %32, %cst_41 {dimension_numbers = #tpu.dot_dimension_numbers<[1], [0], [0], [1], [0, 0, 1, 1], [], []>} : vector<2x32xf32>, vector<32x64xf32>, vector<2x64xf32> -> vector<2x64xf32>
    %cst_42 = arith.constant dense<0.000000e+00> : vector<2x32xf32>
    %153 = tpu.matmul %151, %33, %cst_42 {dimension_numbers = #tpu.dot_dimension_numbers<[1], [0], [0], [1], [0, 0, 1, 1], [], []>} : vector<2x32xf32>, vector<32x32xf32>, vector<2x32xf32> -> vector<2x32xf32>
    %154 = arith.addf %22, %152 : vector<2x64xf32>
    %155 = arith.negf %154 : vector<2x64xf32>
    %156 = math.exp %155 : vector<2x64xf32>
    %cst_43 = arith.constant 1.000000e+00 : f32
    %157 = vector.broadcast %cst_43 : f32 to vector<2x64xf32>
    %158 = arith.addf %157, %156 : vector<2x64xf32>
    %159 = arith.divf %157, %158 : vector<2x64xf32>
    %160 = vector.extract_strided_slice %159 {offsets = [0, 0], sizes = [2, 32], strides = [1, 1]} : vector<2x64xf32> to vector<2x32xf32>
    %161 = vector.extract_strided_slice %159 {offsets = [0, 32], sizes = [2, 32], strides = [1, 1]} : vector<2x64xf32> to vector<2x32xf32>
    %162 = arith.addf %153, %36 : vector<2x32xf32>
    %163 = arith.mulf %160, %162 : vector<2x32xf32>
    %164 = arith.addf %30, %163 : vector<2x32xf32>
    %165 = math.tanh %164 : vector<2x32xf32>
    %cst_44 = arith.constant 1.000000e+00 : f32
    %166 = vector.broadcast %cst_44 : f32 to vector<2x32xf32>
    %167 = arith.subf %166, %161 : vector<2x32xf32>
    %168 = arith.mulf %167, %165 : vector<2x32xf32>
    %169 = arith.mulf %161, %151 : vector<2x32xf32>
    %170 = arith.addf %168, %169 : vector<2x32xf32>
    %cst_45 = arith.constant dense<0.000000e+00> : vector<2x64xf32>
    %171 = tpu.matmul %170, %32, %cst_45 {dimension_numbers = #tpu.dot_dimension_numbers<[1], [0], [0], [1], [0, 0, 1, 1], [], []>} : vector<2x32xf32>, vector<32x64xf32>, vector<2x64xf32> -> vector<2x64xf32>
    %cst_46 = arith.constant dense<0.000000e+00> : vector<2x32xf32>
    %172 = tpu.matmul %170, %33, %cst_46 {dimension_numbers = #tpu.dot_dimension_numbers<[1], [0], [0], [1], [0, 0, 1, 1], [], []>} : vector<2x32xf32>, vector<32x32xf32>, vector<2x32xf32> -> vector<2x32xf32>
    %173 = arith.addf %23, %171 : vector<2x64xf32>
    %174 = arith.negf %173 : vector<2x64xf32>
    %175 = math.exp %174 : vector<2x64xf32>
    %cst_47 = arith.constant 1.000000e+00 : f32
    %176 = vector.broadcast %cst_47 : f32 to vector<2x64xf32>
    %177 = arith.addf %176, %175 : vector<2x64xf32>
    %178 = arith.divf %176, %177 : vector<2x64xf32>
    %179 = vector.extract_strided_slice %178 {offsets = [0, 0], sizes = [2, 32], strides = [1, 1]} : vector<2x64xf32> to vector<2x32xf32>
    %180 = vector.extract_strided_slice %178 {offsets = [0, 32], sizes = [2, 32], strides = [1, 1]} : vector<2x64xf32> to vector<2x32xf32>
    %181 = arith.addf %172, %36 : vector<2x32xf32>
    %182 = arith.mulf %179, %181 : vector<2x32xf32>
    %183 = arith.addf %31, %182 : vector<2x32xf32>
    %184 = math.tanh %183 : vector<2x32xf32>
    %cst_48 = arith.constant 1.000000e+00 : f32
    %185 = vector.broadcast %cst_48 : f32 to vector<2x32xf32>
    %186 = arith.subf %185, %180 : vector<2x32xf32>
    %187 = arith.mulf %186, %184 : vector<2x32xf32>
    %188 = arith.mulf %180, %170 : vector<2x32xf32>
    %189 = arith.addf %187, %188 : vector<2x32xf32>
    %c0_49 = arith.constant 0 : index
    %c0_50 = arith.constant 0 : index
    %190 = vector.load %arg9[%c0_49, %c0_50] : memref<32x32xf32, #tpu.memory_space<vmem>>, vector<32x32xf32>
    %cst_51 = arith.constant dense<0.000000e+00> : vector<2x32xf32>
    %191 = tpu.matmul %189, %190, %cst_51 {dimension_numbers = #tpu.dot_dimension_numbers<[1], [0], [0], [1], [0, 0, 1, 1], [], []>} : vector<2x32xf32>, vector<32x32xf32>, vector<2x32xf32> -> vector<2x32xf32>
    %c0_52 = arith.constant 0 : index
    %c0_53 = arith.constant 0 : index
    %192 = vector.load %arg10[%c0_52, %c0_53] : memref<1x32xf32, #tpu.memory_space<vmem>>, vector<1x32xf32>
    %193 = vector.broadcast %192 : vector<1x32xf32> to vector<2x32xf32>
    %194 = arith.addf %191, %193 : vector<2x32xf32>
    %c0_54 = arith.constant 0 : index
    %c0_55 = arith.constant 0 : index
    %195 = vector.load %arg11[%c0_54, %c0_55] : memref<2x32xf32, #tpu.memory_space<vmem>>, vector<2x32xf32>
    tpu.vector_store %arg11[%c0_54, %c0_55], %194 {strides = array<i32>} : memref<2x32xf32, #tpu.memory_space<vmem>>, vector<2x32xf32>,
    return
  }
  func.func @transform_0(%arg0: i32) -> (i32, i32) {
    %c0_i32 = arith.constant 0 : i32
    %c0_i32_0 = arith.constant 0 : i32
    %c0_i32_1 = arith.constant 0 : i32
    return %c0_i32, %c0_i32_0 : i32, i32
  }
  func.func @transform_1(%arg0: i32) -> (i32, i32) {
    %c0_i32 = arith.constant 0 : i32
    %c0_i32_0 = arith.constant 0 : i32
    %c0_i32_1 = arith.constant 0 : i32
    return %c0_i32, %c0_i32_0 : i32, i32
  }
  func.func @transform_2(%arg0: i32) -> (i32, i32) {
    %c0_i32 = arith.constant 0 : i32
    %c0_i32_0 = arith.constant 0 : i32
    %c0_i32_1 = arith.constant 0 : i32
    return %c0_i32, %c0_i32_0 : i32, i32
  }
  func.func @transform_3(%arg0: i32) -> (i32, i32) {
    %c0_i32 = arith.constant 0 : i32
    %c0_i32_0 = arith.constant 0 : i32
    %c0_i32_1 = arith.constant 0 : i32
    return %c0_i32, %c0_i32_0 : i32, i32
  }
  func.func @transform_4(%arg0: i32) -> (i32, i32) {
    %c0_i32 = arith.constant 0 : i32
    %c0_i32_0 = arith.constant 0 : i32
    %c0_i32_1 = arith.constant 0 : i32
    return %c0_i32, %c0_i32_0 : i32, i32
  }
  func.func @transform_5(%arg0: i32) -> (i32, i32) {
    %c0_i32 = arith.constant 0 : i32
    %c0_i32_0 = arith.constant 0 : i32
    %c0_i32_1 = arith.constant 0 : i32
    return %c0_i32, %c0_i32_0 : i32, i32
  }
  func.func @transform_6(%arg0: i32) -> (i32, i32) {
    %c0_i32 = arith.constant 0 : i32
    %c0_i32_0 = arith.constant 0 : i32
    %c0_i32_1 = arith.constant 0 : i32
    return %c0_i32, %c0_i32_0 : i32, i32
  }
  func.func @transform_7(%arg0: i32) -> (i32, i32) {
    %c0_i32 = arith.constant 0 : i32
    %c0_i32_0 = arith.constant 0 : i32
    %c0_i32_1 = arith.constant 0 : i32
    return %c0_i32, %c0_i32_0 : i32, i32
  }
  func.func @transform_8(%arg0: i32) -> (i32, i32) {
    %c0_i32 = arith.constant 0 : i32
    %c0_i32_0 = arith.constant 0 : i32
    %c0_i32_1 = arith.constant 0 : i32
    return %c0_i32, %c0_i32_0 : i32, i32
  }
  func.func @transform_9(%arg0: i32) -> (i32, i32) {
    %c0_i32 = arith.constant 0 : i32
    %c0_i32_0 = arith.constant 0 : i32
    %c0_i32_1 = arith.constant 0 : i32
    return %c0_i32, %c0_i32_0 : i32, i32
  }
  func.func @transform_10(%arg0: i32) -> (i32, i32) {
    %c0_i32 = arith.constant 0 : i32
    %c0_i32_0 = arith.constant 0 : i32
    %c0_i32_1 = arith.constant 0 : i32
    return %c0_i32, %c0_i32_0 : i32, i32
  }
}

</mosaic_0001>

<bundles_post_ra>
// kernel: tpu_custom_call.1
= control target key start
LH: loop header
LB: loop body
LE: loop exit
PB: predicated region body
PF: predicated region fallthrough
CT: control target
= control target key end

     0   :  { %15 = vsyncpa [#allocation3], 0  ;;  %s2765_s0 = inlined_call_operand.vmem [shape: s32[16,1], index: 0, kind: input, shape index: {}]   ;;  %s2766_s1 = inlined_call_operand.hbm [shape: f32[32,64], index: 1, kind: input, shape index: {}]   ;;  %s2767_s2 = inlined_call_operand.hbm [shape: f32[32,32], index: 2, kind: input, shape index: {}]   ;;  %s2768_s3 = inlined_call_operand.hbm [shape: f32[32,64], index: 3, kind: input, shape index: {}]   ;;  %s2769_s4 = inlined_call_operand.vmem [shape: f32[32,32], index: 4, kind: input, shape index: {}]   ;;  %s2770_s5 = inlined_call_operand.vmem [shape: f32[1,64], index: 5, kind: input, shape index: {}]   ;;  %s2771_s6 = inlined_call_operand.vmem [shape: f32[1,32], index: 6, kind: input, shape index: {}]   ;;  %s2772_s7 = inlined_call_operand.vmem [shape: f32[1,32], index: 7, kind: input, shape index: {}]   ;;  %s2773_s8 = inlined_call_operand.hbm [shape: f32[32,32], index: 8, kind: input, shape index: {}]   ;;  %s2774_s9 = inlined_call_operand.vmem [shape: f32[1,32], index: 9, kind: input, shape index: {}]   ;;  %s2775_s10 = inlined_call_operand.hbm [shape: f32[2,32], index: 10, kind: output, shape index: {}]  }
   0x1   :  { %16 = vsyncpa [#allocation6], 0 }
   0x2   :  { %17 = vsyncpa [#allocation9], 0 }
   0x3   :  { %18 = vsyncpa [#allocation4], 0  ;;  %s2400_s13 = smov [#allocation5]   ;;  %s2401_s15 = smov [#allocation2]  }
   0x4   :  { %s38_s14 = sshll.u32 %s2400_s13, 4  ;;  %s26_s16 = sshll.u32 %s2401_s15, 4  ;;  %s39_s14 = int_to_ptr.vmem [resolvable:$true] %s38_s14  ;;  %s2468_s16 = int_to_ptr.vmem [resolvable:$true] %s26_s16 }
   0x5   :  { %s2282_s19 = scalar_lea.hbm %s2767_s2, 512 }
   0x6   :  { %p2283_p0 = scmp.ne.s32.totalorder %s2767_s2, %s2282_s19  ;;  %p2286_p1 = scmp.lt.u32.totalorder %s2282_s19, %s2767_s2 }
   0x8   :  { %p2288_p2 = pnand %p2286_p1, %p2283_p0 }
   0xa   :  { %2291 = shalt.err (!%p2288_p2)
}
   0xb   :  { %s2292_s24 = scalar_lea.vmem %s39_s14, 512  ;;  %p2297_p4 = scmp.lt.s32.totalorder %s39_s14, %s39_s14 }
   0xc   :  { %p2293_p3 = scmp.ne.s32.totalorder %s39_s14, %s2292_s24  ;;  %p2298_p5 = scmp.lt.s32.totalorder %s2292_s24, %s2292_s24 }
   0xe   :  { %p2299_p6 = por %p2298_p5, %p2297_p4 }
  0x10   :  { %p2300_p7 = pnand %p2299_p6, %p2293_p3 }
  0x12   :  { %2303 = shalt.err (!%p2300_p7)
}
  0x13   :  { %s2402_s25 = smov 128   ;;  %s2403_s26 = smov 8  }
  0x14   :  { %44 = dma.hbm_to_vmem [thread:$0]  %s2767_s2, 512, %s39_s14, [#allocation6], %s2402_s25, %s2402_s25, %s2403_s26  }
  0x15   :  { %s2304_s11 = scalar_lea.hbm %s2766_s1, 512 }
  0x16   :  { %p2305_p8 = scmp.ne.s32.totalorder %s2766_s1, %s2304_s11  ;;  %p2308_p9 = scmp.lt.u32.totalorder %s2304_s11, %s2766_s1 }
  0x18   :  { %p2310_p10 = pnand %p2308_p9, %p2305_p8 }
  0x1a   :  { %2313 = shalt.err (!%p2310_p10)
}
  0x1b   :  { %s2314_s18 = scalar_lea.vmem %s2468_s16, 512  ;;  %p2319_p12 = scmp.lt.s32.totalorder %s2468_s16, %s2468_s16 }
  0x1c   :  { %p2315_p11 = scmp.ne.s32.totalorder %s2468_s16, %s2314_s18  ;;  %p2320_p13 = scmp.lt.s32.totalorder %s2314_s18, %s2314_s18 }
  0x1e   :  { %p2321_p0 = por %p2320_p13, %p2319_p12 }
  0x20   :  { %p2322_p1 = pnand %p2321_p0, %p2315_p11 }
  0x22   :  { %2325 = shalt.err (!%p2322_p1)
}
  0x23   :  { %32 = dma.hbm_to_vmem [thread:$0]  %s2766_s1, 512, %s2468_s16, [#allocation3], %s2402_s25, %s2402_s25, %s2403_s26  }
  0x24   :  { %s2404_s19 = smov [#allocation7]   ;;  %s2405_s21 = smov [#allocation8]  }
  0x25   :  { %s50_s20 = sshll.u32 %s2404_s19, 4  ;;  %s70_s22 = sshll.u32 %s2405_s21, 4  ;;  %s51_s20 = int_to_ptr.vmem [resolvable:$true] %s50_s20  ;;  %s2505_s22 = int_to_ptr.vmem [resolvable:$true] %s70_s22 }
  0x26   :  { %s2326_s27 = scalar_lea.hbm %s2768_s3, 512 }
  0x27   :  { %p2327_p2 = scmp.ne.s32.totalorder %s2768_s3, %s2326_s27  ;;  %p2330_p3 = scmp.lt.u32.totalorder %s2326_s27, %s2768_s3 }
  0x29   :  { %p2332_p4 = pnand %p2330_p3, %p2327_p2 }
  0x2b   :  { %2335 = shalt.err (!%p2332_p4)
}
  0x2c   :  { %s2336_s1 = scalar_lea.vmem %s51_s20, 512  ;;  %p2341_p6 = scmp.lt.s32.totalorder %s51_s20, %s51_s20 }
  0x2d   :  { %p2337_p5 = scmp.ne.s32.totalorder %s51_s20, %s2336_s1  ;;  %p2342_p7 = scmp.lt.s32.totalorder %s2336_s1, %s2336_s1 }
  0x2f   :  { %p2343_p8 = por %p2342_p7, %p2341_p6 }
  0x31   :  { %p2344_p9 = pnand %p2343_p8, %p2337_p5 }
  0x33   :  { %2347 = shalt.err (!%p2344_p9)
}
  0x34   :  { %56 = dma.hbm_to_vmem [thread:$0]  %s2768_s3, 512, %s51_s20, [#allocation6], %s2402_s25, %s2402_s25, %s2403_s26  }
  0x35   :  { %s2348_s17 = scalar_lea.hbm %s2773_s8, 512 }
  0x36   :  { %p2349_p10 = scmp.ne.s32.totalorder %s2773_s8, %s2348_s17  ;;  %p2352_p11 = scmp.lt.u32.totalorder %s2348_s17, %s2773_s8 }
  0x38   :  { %p2354_p12 = pnand %p2352_p11, %p2349_p10 }
  0x3a   :  { %2357 = shalt.err (!%p2354_p12)
}
  0x3b   :  { %s2358_s21 = scalar_lea.vmem %s2505_s22, 512  ;;  %p2363_p0 = scmp.lt.s32.totalorder %s2505_s22, %s2505_s22 }
  0x3c   :  { %p2359_p13 = scmp.ne.s32.totalorder %s2505_s22, %s2358_s21  ;;  %p2364_p1 = scmp.lt.s32.totalorder %s2358_s21, %s2358_s21 }
  0x3e   :  { %p2365_p2 = por %p2364_p1, %p2363_p0 }
  0x40   :  { %p2366_p3 = pnand %p2365_p2, %p2359_p13 }
  0x42   :  { %2369 = shalt.err (!%p2366_p3)
}
  0x43   :  { %76 = dma.hbm_to_vmem [thread:$0]  %s2773_s8, 512, %s2505_s22, [#allocation9], %s2402_s25, %s2402_s25, %s2403_s26  }
  0x44   :  { %2392 = dma.done.wait [#allocation3], 512  }
  0x45   :  { %2393 = vsyncadd [#allocation3], 4294966784 }
  0x46   :  { %2394 = dma.done.wait [#allocation6], 1024  }
  0x47   :  { %2395 = vsyncadd [#allocation6], 4294966272 }
  0x48   :  { %2396 = dma.done.wait [#allocation9], 512  }
  0x49   :  { %2397 = vsyncadd [#allocation9], 4294966784  ;;  %v2406_v0 = vmov 0   ;;  %v91_v1 = vld [vmem:[%s2765_s0] sm:$0xff]  ;;  %v92_v2 = vld [vmem:[%s2765_s0 + $0x8] sm:$0xff]  ;;  %v2407_v15 = vmov 0.0|0.0   ;;  %v93_v16 = vlaneseq }
  0x4a   :  { %2233 = vset.pattern.permute.xlu0 %v2406_v0  ;;  %v107_v3 = vld [vmem:[#allocation2] sm:$0xff]  ;;  %v108_v4 = vld [vmem:[#allocation2 + $0x8] sm:$0xff]  ;;  %v109_v9 = vld [vmem:[#allocation2 + $0x10] sm:$0xff]  ;;  %vm118_vm0 = vcmask 261120   ;;  %v2408_v21 = vmov 0.0   ;;  %vm2409_vm3 = vmmov 0  }
  0x4b   :  { %96 = vperm.xlu0 %2233, %v91_v1   ;;  %v200_v5 = vld [vmem:[#allocation5] sm:$0xff]  ;;  %v201_v6 = vld [vmem:[#allocation5 + $0x8] sm:$0xff]  ;;  %v2102_v7 = vpack.c.bf16 %v108_v4, %v107_v3  ;;  %v110_v10 = vld [vmem:[#allocation2 + $0x18] sm:$0xff]  ;;  %v94_v17 = vand.u32 127, %v93_v16  ;;  %s2410_s13 = smov 32   ;;  %s2412_s18 = smov [#allocation10]  }
  0x4c   :  { %v2110_v8 = vpack.c.bf16 %v201_v6, %v200_v5  ;;  %v202_v11 = vld [vmem:[#allocation5 + $0x10] sm:$0xff]  ;;  %v2106_v12 = vpack.c.bf16 %v110_v10, %v109_v9  ;;  %v203_v13 = vld [vmem:[#allocation5 + $0x18] sm:$0xff]  ;;  %v286_v19 = vld [vmem:[#allocation7] sm:$0xff]  ;;  %s1752_s2 = sshll.u32 %s2412_s18, 4  ;;  %vm1744_vm4 = vcmask 254976   ;;  %s1753_s2 = int_to_ptr.vmem [resolvable:$true] %s1752_s2 }
  0x4d   :  { %2103 = vmatprep.subr.bf16.mxu0 %v2102_v7  ;;  %v2114_v14 = vpack.c.bf16 %v203_v13, %v202_v11  ;;  %v287_v20 = vld [vmem:[#allocation7 + $0x8] sm:$0xff]  ;;  %v290_v23 = vld [vmem:[%s2769_s4] sm:$0xff]  ;;  %v291_v24 = vld [vmem:[%s2769_s4 + $0x8] sm:$0xff]  ;;  %s2370_s14 = scalar_lea.vmem %s1753_s2, 32  ;;  %p2375_p5 = scmp.lt.s32.totalorder %s1753_s2, %s1753_s2 }
  0x4e   :  { %2111 = vmatprep.subr.bf16.mxu1 %v2110_v8  ;;  %2105 = vmatpush3.bf16.msra.mxu0 %v2102_v7  ;;  %v2559_v26 = vpack.c.bf16 %v287_v20, %v286_v19  ;;  %v288_v27 = vld [vmem:[#allocation7 + $0x10] sm:$0xff]  ;;  %v289_v28 = vld [vmem:[#allocation7 + $0x18] sm:$0xff]  ;;  %v2561_v29 = vpack.c.bf16 %v291_v24, %v290_v23  ;;  %v292_v31 = vld [vmem:[%s2769_s4 + $0x10] sm:$0xff]  ;;  %p2371_p4 = scmp.ne.s32.totalorder %s1753_s2, %s2370_s14  ;;  %p2376_p6 = scmp.lt.s32.totalorder %s2370_s14, %s2370_s14 }
  0x4f   :  { %99 = vperm.xlu0 %2233, %v92_v2   ;;  %2113 = vmatpush3.bf16.msra.mxu1 %v2110_v8  ;;  %v293_v32 = vld [vmem:[%s2769_s4 + $0x18] sm:$0xff]  ;;  %v2573_v33 = vpack.c.bf16 %v289_v28, %v288_v27  ;;  %v1765_v35 = vld [vmem:[%s2770_s5] ss:$0 sm:$0xff] }
  0x50   :  { %2107 = vmatprep.subr.bf16.mxu0 %v2106_v12  ;;  %2115 = vmatprep.subr.bf16.mxu1 %v2114_v14  ;;  %v2579_v34 = vpack.c.bf16 %v293_v32, %v292_v31  ;;  %v1768_v36 = vld [vmem:[%s2771_s6] ss:$0 sm:$0xff]  ;;  %p2377_p7 = por %p2376_p6, %p2375_p5 }
  0x51   :  { %v2618_v52 = vld [vmem:[%s2772_s7] ss:$0 sm:$0xff]  ;;  %s2411_s7 = smov 96  }
  0x52   :  { %2109 = vmatpush3.bf16.msra.mxu0 %v2106_v12  ;;  %p2378_p8 = pnand %p2377_p7, %p2371_p4 }
  0x53   :  { %2117 = vmatpush3.bf16.msra.mxu1 %v2114_v14  ;;  %2118 = vmatprep.subr.bf16.mxu0 %v2407_v15 }
  0x54   :  { %2124 = vmatprep.subr.bf16.mxu1 %v2407_v15 }
  0xca   :  { %v97_v18 = vpop.permute.xlu0 %96 }
  0xcb   :  { %vm101_vm1 = vcmp.eq.s32.totalorder %v94_v17, %v97_v18 }
  0xcc   :  { %v1763_v22 = vsel %vm101_vm1, 1.0, %v2408_v21 }
  0xcd   :  { %1901 = vmatprep.mubr.msk.f32.mxu0 %vm118_vm0, %v1763_v22  ;;  %1912 = vmatprep.mubr.msk.f32.mxu1 %vm118_vm0, %v1763_v22 }
  0xce   :  { %v100_v25 = vpop.permute.xlu0 %99 }
  0xcf   :  { %vm102_vm2 = vcmp.eq.s32.totalorder %v94_v17, %v100_v25 }
  0xd0   :  { %v1764_v30 = vsel %vm102_vm2, 1.0, %v2408_v21 }
  0xd1   :  { %1902 = vmatmul.mubr.msk.f32.vlgmr.msra.gmra.mrb[0].mxu0 %vm118_vm0, %v1764_v30  ;;  %1913 = vmatmul.mubr.msk.f32.vlgmr.msra.gmra.mrb[0].mxu1 %vm118_vm0, %v1764_v30 }
  0xd2   :  { %2120 = vmatpush3.bf16.msra.mxu0 %v2559_v26  ;;  %1923 = vmatprep.mubr.msk.f32.mxu0 %vm2409_vm3, %v2408_v21 }
  0xd3   :  { %2121 = vmatprep.subr.bf16.mxu0 %v2407_v15  ;;  %2126 = vmatpush3.bf16.msra.mxu1 %v2561_v29 }
  0xd4   :  { %2127 = vmatprep.subr.bf16.mxu1 %v2407_v15  ;;  %1934 = vmatprep.mubr.msk.f32.mxu1 %vm2409_vm3, %v2408_v21 }
  0xd6   :  { %2123 = vmatpush3.bf16.msra.mxu0 %v2573_v33 }
  0xd7   :  { %2129 = vmatpush3.bf16.msra.mxu1 %v2579_v34  ;;  %2130 = vmatprep.subr.bf16.mxu0 %v2407_v15 }
  0xd8   :  { %2136 = vmatprep.subr.bf16.mxu1 %v2407_v15 }
  0xd9   :  { %1924 = vmatmul.mubr.f32.vlgmr.msra.gmra.mrb[2].mxu0 %v2408_v21 }
  0xda   :  { %1935 = vmatmul.mubr.f32.vlgmr.msra.gmra.mrb[2].mxu1 %v2408_v21  ;;  %2132 = vmatpush3.bf16.msra.mxu0 %v2559_v26 }
  0xdb   :  { %2138 = vmatpush3.bf16.msra.mxu1 %v2561_v29  ;;  %2133 = vmatprep.subr.bf16.mxu0 %v2407_v15 }
  0xdc   :  { %2139 = vmatprep.subr.bf16.mxu1 %v2407_v15  ;;  %1945 = vmatprep.mubr.msk.f32.mxu0 %vm2409_vm3, %v2408_v21 }
  0xdd   :  { %1956 = vmatprep.mubr.msk.f32.mxu1 %vm2409_vm3, %v2408_v21 }
  0xde   :  { %2135 = vmatpush3.bf16.msra.mxu0 %v2573_v33 }
  0xdf   :  { %2141 = vmatpush3.bf16.msra.mxu1 %v2579_v34  ;;  %2142 = vmatprep.subr.bf16.mxu0 %v2407_v15 }
  0xe0   :  { %2148 = vmatprep.subr.bf16.mxu1 %v2407_v15 }
 0x1a4   :  { %v1903_v37 = vpop.f32.mrb[0].mxu0  ;;  %v1914_v38 = vpop.f32.mrb[0].mxu1 }
 0x1a5   :  { %v2608_v39 = vadd.f32 %v1903_v37, %v1765_v35  ;;  %v2610_v40 = vadd.f32 %v1914_v38, %v1768_v36  ;;  %v191_v41 = vpop.f32.mrb[1].mxu0  ;;  %v277_v42 = vpop.f32.mrb[1].mxu1 }
 0x1a6   :  { %v2612_v43 = vadd.f32 %v1765_v35, %v191_v41  ;;  %v2621_v55 = vadd.f32 %v1768_v36, %v277_v42 }
 0x1ac   :  { %v370_v44 = vpop.f32.mrb[2].mxu0 }
 0x1ad   :  { %v374_v45 = vadd.f32 %v370_v44, %v2612_v43  ;;  %v1925_v46 = vpop.f32.mrb[3].mxu0  ;;  %v447_v47 = vpop.f32.mrb[2].mxu1 }
 0x1ae   :  { %v1936_v48 = vpop.f32.mrb[3].mxu1  ;;  %v448_v53 = vadd.f32 %v2618_v52, %v447_v47 }
 0x1af   :  { %v1772_v49 = vmul.f32 -1.442695, %v374_v45 }
 0x1b1   :  { %2234 = vpow2.f32 %v1772_v49 }
 0x1bb   :  { %v2235_v50 = vpop.eup %2234 }
 0x1bc   :  { %v378_v51 = vadd.f32 1.0, %v2235_v50 }
 0x1be   :  { %2236 = vrcp.f32 %v378_v51 }
 0x1c8   :  { %v2237_v54 = vpop.eup %2236 }
 0x1c9   :  { %v451_v56 = vmul.f32 %v2237_v54, %v448_v53  ;;  %v454_v59 = vsub.f32 1.0, %v2237_v54  ;;  %v460_v61 = vmul.f32 0.0, %v2237_v54 }
 0x1cb   :  { %v452_v57 = vadd.f32 %v451_v56, %v2621_v55 }
 0x1cd   :  { %2238 = vtanh.f32 %v452_v57 }
 0x1d7   :  { %v2239_v58 = vpop.eup %2238 }
 0x1d8   :  { %456 = vrot.lane.b32.xlu1 %v2239_v58, %s2410_s13 }
 0x24a   :  { %v457_v60 = vpop.permute.xlu1 %456 }
 0x24b   :  { %v459_v62 = vmul.f32 %v457_v60, %v454_v59 }
 0x24d   :  { %v461_v63 = vadd.f32 %v460_v61, %v459_v62 }
 0x24f   :  { %463 = vrot.lane.b32.xlu1 %v461_v63, %s2411_s7  ;;  %v629_v11 = vrot.slane %v461_v63, 6 }
 0x2c1   :  { %v464_v0 = vpop.permute.xlu1 %463 }
 0x2c2   :  { %1946 = vmatmul.mubr.msk.f32.vlgmr.msra.gmra.mrb[4].mxu0 %vm118_vm0, %v464_v0  ;;  %1957 = vmatmul.mubr.msk.f32.vlgmr.msra.gmra.mrb[4].mxu1 %vm118_vm0, %v464_v0 }
 0x2c3   :  { %2144 = vmatpush3.bf16.msra.mxu0 %v2559_v26  ;;  %2150 = vmatpush3.bf16.msra.mxu1 %v2561_v29 }
 0x2c4   :  { %2145 = vmatprep.subr.bf16.mxu0 %v2407_v15  ;;  %2151 = vmatprep.subr.bf16.mxu1 %v2407_v15 }
 0x2c5   :  { %1967 = vmatprep.mubr.msk.f32.mxu0 %vm2409_vm3, %v2408_v21  ;;  %1978 = vmatprep.mubr.msk.f32.mxu1 %vm2409_vm3, %v2408_v21 }
 0x2c7   :  { %2147 = vmatpush3.bf16.msra.mxu0 %v2573_v33  ;;  %2153 = vmatpush3.bf16.msra.mxu1 %v2579_v34 }
 0x2c8   :  { %2154 = vmatprep.subr.bf16.mxu0 %v2407_v15  ;;  %2160 = vmatprep.subr.bf16.mxu1 %v2407_v15 }
 0x395   :  { %v533_v1 = vpop.f32.mrb[4].mxu0  ;;  %v613_v2 = vpop.f32.mrb[4].mxu1 }
 0x396   :  { %v538_v3 = vrot.slane %v533_v1, 6  ;;  %v1947_v4 = vpop.f32.mrb[5].mxu0  ;;  %v1958_v5 = vpop.f32.mrb[5].mxu1  ;;  %v614_v10 = vadd.f32 %v2618_v52, %v613_v2 }
 0x398   :  { %v540_v6 = vadd.f32 %v538_v3, %v2612_v43  ;;  %v618_v12 = vrot.slane %v614_v10, 6 }
 0x39a   :  { %v1774_v7 = vmul.f32 -1.442695, %v540_v6 }
 0x39c   :  { %2240 = vpow2.f32 %v1774_v7 }
 0x3a6   :  { %v2241_v8 = vpop.eup %2240 }
 0x3a7   :  { %v544_v9 = vadd.f32 1.0, %v2241_v8 }
 0x3a9   :  { %2242 = vrcp.f32 %v544_v9 }
 0x3b3   :  { %v2243_v13 = vpop.eup %2242 }
 0x3b4   :  { %v620_v14 = vmul.f32 %v2243_v13, %v618_v12  ;;  %v631_v16 = vmul.f32 %v2243_v13, %v629_v11  ;;  %v623_v19 = vsub.f32 1.0, %v2243_v13 }
 0x3b6   :  { %v621_v17 = vadd.f32 %v620_v14, %v2621_v55 }
 0x3b8   :  { %2244 = vtanh.f32 %v621_v17 }
 0x3c2   :  { %v2245_v18 = vpop.eup %2244 }
 0x3c3   :  { %625 = vrot.lane.b32.xlu0 %v2245_v18, %s2410_s13 }
 0x435   :  { %v626_v20 = vpop.permute.xlu0 %625 }
 0x436   :  { %v628_v22 = vmul.f32 %v626_v20, %v623_v19 }
 0x438   :  { %v632_v23 = vadd.f32 %v631_v16, %v628_v22 }
 0x43a   :  { %v634_v24 = vrot.slane %v632_v23, 2  ;;  %v801_v42 = vrot.slane %v632_v23, 6 }
 0x43c   :  { %635 = vrot.lane.b32.xlu1 %v634_v24, %s2411_s7 }
 0x4ae   :  { %v636_v25 = vpop.permute.xlu1 %635 }
 0x4af   :  { %1968 = vmatmul.mubr.msk.f32.vlgmr.msra.gmra.mrb[6].mxu0 %vm118_vm0, %v636_v25  ;;  %1979 = vmatmul.mubr.msk.f32.vlgmr.msra.gmra.mrb[6].mxu1 %vm118_vm0, %v636_v25 }
 0x4b0   :  { %2156 = vmatpush3.bf16.msra.mxu0 %v2559_v26  ;;  %2162 = vmatpush3.bf16.msra.mxu1 %v2561_v29 }
 0x4b1   :  { %2157 = vmatprep.subr.bf16.mxu0 %v2407_v15  ;;  %2163 = vmatprep.subr.bf16.mxu1 %v2407_v15 }
 0x4b2   :  { %1989 = vmatprep.mubr.msk.f32.mxu0 %vm2409_vm3, %v2408_v21  ;;  %2000 = vmatprep.mubr.msk.f32.mxu1 %vm2409_vm3, %v2408_v21 }
 0x4b4   :  { %2159 = vmatpush3.bf16.msra.mxu0 %v2573_v33  ;;  %2165 = vmatpush3.bf16.msra.mxu1 %v2579_v34 }
 0x4b5   :  { %2166 = vmatprep.subr.bf16.mxu0 %v2407_v15  ;;  %2172 = vmatprep.subr.bf16.mxu1 %v2407_v15 }
 0x582   :  { %v705_v27 = vpop.f32.mrb[6].mxu0  ;;  %v785_v28 = vpop.f32.mrb[6].mxu1 }
 0x583   :  { %v710_v30 = vrot.slane %v705_v27, 4  ;;  %v1969_v31 = vpop.f32.mrb[7].mxu0  ;;  %v1980_v32 = vpop.f32.mrb[7].mxu1  ;;  %v786_v41 = vadd.f32 %v2618_v52, %v785_v28 }
 0x585   :  { %v712_v35 = vadd.f32 %v710_v30, %v2612_v43  ;;  %v790_v44 = vrot.slane %v786_v41, 4 }
 0x587   :  { %v1777_v36 = vmul.f32 -1.442695, %v712_v35 }
 0x589   :  { %2246 = vpow2.f32 %v1777_v36 }
 0x593   :  { %v2247_v37 = vpop.eup %2246 }
 0x594   :  { %v716_v38 = vadd.f32 1.0, %v2247_v37 }
 0x596   :  { %2248 = vrcp.f32 %v716_v38 }
 0x5a0   :  { %v2249_v45 = vpop.eup %2248 }
 0x5a1   :  { %v792_v46 = vmul.f32 %v2249_v45, %v790_v44  ;;  %v803_v47 = vmul.f32 %v2249_v45, %v801_v42  ;;  %v795_v50 = vsub.f32 1.0, %v2249_v45 }
 0x5a3   :  { %v793_v48 = vadd.f32 %v792_v46, %v2621_v55 }
 0x5a5   :  { %2250 = vtanh.f32 %v793_v48 }
 0x5af   :  { %v2251_v49 = vpop.eup %2250 }
 0x5b0   :  { %797 = vrot.lane.b32.xlu0 %v2251_v49, %s2410_s13 }
 0x622   :  { %v798_v51 = vpop.permute.xlu0 %797 }
 0x623   :  { %v800_v53 = vmul.f32 %v798_v51, %v795_v50 }
 0x625   :  { %v804_v54 = vadd.f32 %v803_v47, %v800_v53 }
 0x627   :  { %v806_v56 = vrot.slane %v804_v54, 4  ;;  %v973_v4 = vrot.slane %v804_v54, 6 }
 0x629   :  { %807 = vrot.lane.b32.xlu1 %v806_v56, %s2411_s7 }
 0x69b   :  { %v808_v57 = vpop.permute.xlu1 %807 }
 0x69c   :  { %1990 = vmatmul.mubr.msk.f32.vlgmr.msra.gmra.mrb[8].mxu0 %vm118_vm0, %v808_v57  ;;  %2001 = vmatmul.mubr.msk.f32.vlgmr.msra.gmra.mrb[8].mxu1 %vm118_vm0, %v808_v57 }
 0x69d   :  { %2168 = vmatpush3.bf16.msra.mxu0 %v2559_v26  ;;  %2174 = vmatpush3.bf16.msra.mxu1 %v2561_v29 }
 0x69e   :  { %2169 = vmatprep.subr.bf16.mxu0 %v2407_v15  ;;  %2175 = vmatprep.subr.bf16.mxu1 %v2407_v15 }
 0x69f   :  { %2011 = vmatprep.mubr.msk.f32.mxu0 %vm2409_vm3, %v2408_v21  ;;  %2022 = vmatprep.mubr.msk.f32.mxu1 %vm2409_vm3, %v2408_v21 }
 0x6a1   :  { %2171 = vmatpush3.bf16.msra.mxu0 %v2573_v33  ;;  %2177 = vmatpush3.bf16.msra.mxu1 %v2579_v34 }
 0x6a2   :  { %2178 = vmatprep.subr.bf16.mxu0 %v2407_v15  ;;  %2184 = vmatprep.subr.bf16.mxu1 %v2407_v15 }
 0x76f   :  { %v877_v58 = vpop.f32.mrb[8].mxu0  ;;  %v957_v59 = vpop.f32.mrb[8].mxu1 }
 0x770   :  { %v882_v60 = vrot.slane %v877_v58, 2  ;;  %v1991_v61 = vpop.f32.mrb[9].mxu0  ;;  %v2002_v62 = vpop.f32.mrb[9].mxu1  ;;  %v958_v3 = vadd.f32 %v2618_v52, %v957_v59 }
 0x772   :  { %v884_v63 = vadd.f32 %v882_v60, %v2612_v43  ;;  %v962_v5 = vrot.slane %v958_v3, 2 }
 0x774   :  { %v1780_v0 = vmul.f32 -1.442695, %v884_v63 }
 0x776   :  { %2252 = vpow2.f32 %v1780_v0 }
 0x780   :  { %v2253_v1 = vpop.eup %2252 }
 0x781   :  { %v888_v2 = vadd.f32 1.0, %v2253_v1 }
 0x783   :  { %2254 = vrcp.f32 %v888_v2 }
 0x78d   :  { %v2255_v6 = vpop.eup %2254 }
 0x78e   :  { %v964_v7 = vmul.f32 %v2255_v6, %v962_v5  ;;  %v975_v8 = vmul.f32 %v2255_v6, %v973_v4  ;;  %v967_v11 = vsub.f32 1.0, %v2255_v6 }
 0x790   :  { %v965_v9 = vadd.f32 %v964_v7, %v2621_v55 }
 0x792   :  { %2256 = vtanh.f32 %v965_v9 }
 0x79c   :  { %v2257_v10 = vpop.eup %2256 }
 0x79d   :  { %969 = vrot.lane.b32.xlu0 %v2257_v10, %s2410_s13 }
 0x80f   :  { %v970_v43 = vpop.permute.xlu0 %969 }
 0x810   :  { %v972_v12 = vmul.f32 %v970_v43, %v967_v11 }
 0x812   :  { %v976_v13 = vadd.f32 %v975_v8, %v972_v12 }
 0x814   :  { %v978_v14 = vrot.slane %v976_v13, 6 }
 0x816   :  { %979 = vrot.lane.b32.xlu1 %v978_v14, %s2411_s7 }
 0x888   :  { %v980_v16 = vpop.permute.xlu1 %979 }
 0x889   :  { %2012 = vmatmul.mubr.msk.f32.vlgmr.msra.gmra.mrb[10].mxu0 %vm118_vm0, %v980_v16  ;;  %2023 = vmatmul.mubr.msk.f32.vlgmr.msra.gmra.mrb[10].mxu1 %vm118_vm0, %v980_v16 }
 0x88a   :  { %2180 = vmatpush3.bf16.msra.mxu0 %v2559_v26  ;;  %2186 = vmatpush3.bf16.msra.mxu1 %v2561_v29 }
 0x88b   :  { %2181 = vmatprep.subr.bf16.mxu0 %v2407_v15  ;;  %2187 = vmatprep.subr.bf16.mxu1 %v2407_v15 }
 0x88c   :  { %2033 = vmatprep.mubr.msk.f32.mxu0 %vm2409_vm3, %v2408_v21  ;;  %2044 = vmatprep.mubr.msk.f32.mxu1 %vm2409_vm3, %v2408_v21 }
 0x88e   :  { %2183 = vmatpush3.bf16.msra.mxu0 %v2573_v33  ;;  %2189 = vmatpush3.bf16.msra.mxu1 %v2579_v34 }
 0x88f   :  { %2190 = vmatprep.subr.bf16.mxu0 %v2407_v15  ;;  %2196 = vmatprep.subr.bf16.mxu1 %v2407_v15 }
 0x95c   :  { %v1049_v55 = vpop.f32.mrb[10].mxu0  ;;  %v1126_v17 = vpop.f32.mrb[10].mxu1 }
 0x95d   :  { %v1053_v18 = vadd.f32 %v1049_v55, %v2608_v39  ;;  %v2013_v19 = vpop.f32.mrb[11].mxu0  ;;  %v2024_v20 = vpop.f32.mrb[11].mxu1  ;;  %v1127_v25 = vadd.f32 %v2618_v52, %v1126_v17 }
 0x95f   :  { %v1783_v22 = vmul.f32 -1.442695, %v1053_v18 }
 0x961   :  { %2258 = vpow2.f32 %v1783_v22 }
 0x96b   :  { %v2259_v23 = vpop.eup %2258 }
 0x96c   :  { %v1057_v24 = vadd.f32 1.0, %v2259_v23 }
 0x96e   :  { %2260 = vrcp.f32 %v1057_v24 }
 0x978   :  { %v2261_v27 = vpop.eup %2260 }
 0x979   :  { %v1130_v28 = vmul.f32 %v2261_v27, %v1127_v25  ;;  %v1133_v32 = vsub.f32 1.0, %v2261_v27  ;;  %v1140_v36 = vmul.f32 %v2261_v27, %v978_v14 }
 0x97b   :  { %v1131_v30 = vadd.f32 %v1130_v28, %v2610_v40 }
 0x97d   :  { %2262 = vtanh.f32 %v1131_v30 }
 0x987   :  { %v2263_v31 = vpop.eup %2262 }
 0x988   :  { %1135 = vrot.lane.b32.xlu0 %v2263_v31, %s2410_s13 }
 0x9fa   :  { %v1136_v35 = vpop.permute.xlu0 %1135 }
 0x9fb   :  { %v1138_v37 = vmul.f32 %v1136_v35, %v1133_v32 }
 0x9fd   :  { %v1141_v38 = vadd.f32 %v1140_v36, %v1138_v37 }
 0x9ff   :  { %1143 = vrot.lane.b32.xlu1 %v1141_v38, %s2411_s7  ;;  %v1309_v54 = vrot.slane %v1141_v38, 6 }
 0xa71   :  { %v1144_v41 = vpop.permute.xlu1 %1143 }
 0xa72   :  { %2034 = vmatmul.mubr.msk.f32.vlgmr.msra.gmra.mrb[12].mxu0 %vm118_vm0, %v1144_v41  ;;  %2045 = vmatmul.mubr.msk.f32.vlgmr.msra.gmra.mrb[12].mxu1 %vm118_vm0, %v1144_v41 }
 0xa73   :  { %2192 = vmatpush3.bf16.msra.mxu0 %v2559_v26  ;;  %2198 = vmatpush3.bf16.msra.mxu1 %v2561_v29 }
 0xa74   :  { %2193 = vmatprep.subr.bf16.mxu0 %v2407_v15  ;;  %2199 = vmatprep.subr.bf16.mxu1 %v2407_v15 }
 0xa75   :  { %2055 = vmatprep.mubr.msk.f32.mxu0 %vm2409_vm3, %v2408_v21  ;;  %2066 = vmatprep.mubr.msk.f32.mxu1 %vm2409_vm3, %v2408_v21 }
 0xa77   :  { %2195 = vmatpush3.bf16.msra.mxu0 %v2573_v33  ;;  %2201 = vmatpush3.bf16.msra.mxu1 %v2579_v34 }
 0xa78   :  { %2202 = vmatprep.subr.bf16.mxu0 %v2407_v15  ;;  %2208 = vmatprep.subr.bf16.mxu1 %v2407_v15 }
 0xb45   :  { %v1213_v42 = vpop.f32.mrb[12].mxu0  ;;  %v1293_v44 = vpop.f32.mrb[12].mxu1 }
 0xb46   :  { %v1218_v45 = vrot.slane %v1213_v42, 6  ;;  %v2035_v46 = vpop.f32.mrb[13].mxu0  ;;  %v2046_v47 = vpop.f32.mrb[13].mxu1  ;;  %v1294_v53 = vadd.f32 %v2618_v52, %v1293_v44 }
 0xb47   :  { %v1658_v46 = vld [vmem:[#allocation8 + $0x8] sm:$0xff]  ;;  %v1659_v47 = vld [vmem:[#allocation8 + $0x10] sm:$0xff] }
 0xb48   :  { %v1220_v48 = vadd.f32 %v1218_v45, %v2608_v39  ;;  %v1298_v56 = vrot.slane %v1294_v53, 6  ;;  %v1657_v45 = vld [vmem:[#allocation8] sm:$0xff] }
 0xb4a   :  { %v1786_v49 = vmul.f32 -1.442695, %v1220_v48  ;;  %v2215_v48 = vpack.c.bf16 %v1658_v46, %v1657_v45 }
 0xb4c   :  { %2264 = vpow2.f32 %v1786_v49 }
 0xb56   :  { %v2265_v50 = vpop.eup %2264 }
 0xb57   :  { %v1224_v51 = vadd.f32 1.0, %v2265_v50 }
 0xb59   :  { %2266 = vrcp.f32 %v1224_v51 }
 0xb63   :  { %v2267_v57 = vpop.eup %2266 }
 0xb64   :  { %v1300_v58 = vmul.f32 %v2267_v57, %v1298_v56  ;;  %v1311_v59 = vmul.f32 %v2267_v57, %v1309_v54  ;;  %v1303_v62 = vsub.f32 1.0, %v2267_v57  ;;  %v1794_v57 = vld [vmem:[%s2774_s9] ss:$0 sm:$0xff] }
 0xb66   :  { %v1301_v60 = vadd.f32 %v1300_v58, %v2610_v40 }
 0xb68   :  { %2268 = vtanh.f32 %v1301_v60 }
 0xb72   :  { %v2269_v61 = vpop.eup %2268 }
 0xb73   :  { %1305 = vrot.lane.b32.xlu0 %v2269_v61, %s2410_s13 }
 0xbe5   :  { %v1306_v63 = vpop.permute.xlu0 %1305 }
 0xbe6   :  { %v1308_v0 = vmul.f32 %v1306_v63, %v1303_v62 }
 0xbe8   :  { %v1312_v1 = vadd.f32 %v1311_v59, %v1308_v0 }
 0xbea   :  { %v1314_v2 = vrot.slane %v1312_v1, 2  ;;  %v1481_v43 = vrot.slane %v1312_v1, 6 }
 0xbec   :  { %1315 = vrot.lane.b32.xlu1 %v1314_v2, %s2411_s7 }
 0xc5e   :  { %v1316_v3 = vpop.permute.xlu1 %1315 }
 0xc5f   :  { %2056 = vmatmul.mubr.msk.f32.vlgmr.msra.gmra.mrb[14].mxu0 %vm118_vm0, %v1316_v3  ;;  %2067 = vmatmul.mubr.msk.f32.vlgmr.msra.gmra.mrb[14].mxu1 %vm118_vm0, %v1316_v3 }
 0xc60   :  { %2204 = vmatpush3.bf16.msra.mxu0 %v2559_v26  ;;  %2210 = vmatpush3.bf16.msra.mxu1 %v2561_v29 }
 0xc61   :  { %2205 = vmatprep.subr.bf16.mxu0 %v2407_v15  ;;  %2211 = vmatprep.subr.bf16.mxu1 %v2407_v15 }
 0xc62   :  { %2077 = vmatprep.mubr.msk.f32.mxu0 %vm2409_vm3, %v2408_v21  ;;  %2088 = vmatprep.mubr.msk.f32.mxu1 %vm2409_vm3, %v2408_v21 }
 0xc64   :  { %2207 = vmatpush3.bf16.msra.mxu0 %v2573_v33  ;;  %2213 = vmatpush3.bf16.msra.mxu1 %v2579_v34 }
 0xc65   :  { %2214 = vmatprep.subr.bf16.mxu0 %v2407_v15 }
 0xd32   :  { %v1385_v4 = vpop.f32.mrb[14].mxu0  ;;  %v1465_v26 = vpop.f32.mrb[14].mxu1 }
 0xd33   :  { %v1390_v5 = vrot.slane %v1385_v4, 4  ;;  %v2057_v29 = vpop.f32.mrb[15].mxu0  ;;  %v2068_v6 = vpop.f32.mrb[15].mxu1  ;;  %v1466_v11 = vadd.f32 %v2618_v52, %v1465_v26 }
 0xd35   :  { %v1392_v7 = vadd.f32 %v1390_v5, %v2608_v39  ;;  %v1470_v33 = vrot.slane %v1466_v11, 4 }
 0xd37   :  { %v1789_v8 = vmul.f32 -1.442695, %v1392_v7 }
 0xd39   :  { %2270 = vpow2.f32 %v1789_v8 }
 0xd43   :  { %v2271_v9 = vpop.eup %2270 }
 0xd44   :  { %v1396_v10 = vadd.f32 1.0, %v2271_v9 }
 0xd46   :  { %2272 = vrcp.f32 %v1396_v10 }
 0xd50   :  { %v2273_v12 = vpop.eup %2272 }
 0xd51   :  { %v1472_v34 = vmul.f32 %v2273_v12, %v1470_v33  ;;  %v1483_v13 = vmul.f32 %v2273_v12, %v1481_v43  ;;  %v1475_v55 = vsub.f32 1.0, %v2273_v12 }
 0xd53   :  { %v1473_v14 = vadd.f32 %v1472_v34, %v2610_v40 }
 0xd55   :  { %2274 = vtanh.f32 %v1473_v14 }
 0xd5f   :  { %v2275_v16 = vpop.eup %2274 }
 0xd60   :  { %1477 = vrot.lane.b32.xlu0 %v2275_v16, %s2410_s13 }
 0xdd2   :  { %v1478_v17 = vpop.permute.xlu0 %1477 }
 0xdd3   :  { %v1480_v18 = vmul.f32 %v1478_v17, %v1475_v55 }
 0xdd5   :  { %v1484_v19 = vadd.f32 %v1483_v13, %v1480_v18 }
 0xdd7   :  { %v1486_v20 = vrot.slane %v1484_v19, 4  ;;  %v1653_v37 = vrot.slane %v1484_v19, 6 }
 0xdd9   :  { %1487 = vrot.lane.b32.xlu1 %v1486_v20, %s2411_s7 }
 0xe4b   :  { %v1488_v22 = vpop.permute.xlu1 %1487 }
 0xe4c   :  { %2078 = vmatmul.mubr.msk.f32.vlgmr.msra.gmra.mrb[16].mxu0 %vm118_vm0, %v1488_v22  ;;  %2089 = vmatmul.mubr.msk.f32.vlgmr.msra.gmra.mrb[16].mxu1 %vm118_vm0, %v1488_v22 }
 0xe4d   :  { %2099 = vmatprep.mubr.msk.f32.mxu0 %vm2409_vm3, %v2408_v21  ;;  %2216 = vmatpush3.bf16.msra.mxu0 %v2215_v48 }
 0xe4e   :  { %2217 = vmatprep.subr.bf16.mxu0 %v2407_v15 }
 0xf1f   :  { %v1557_v23 = vpop.f32.mrb[16].mxu0  ;;  %v1637_v24 = vpop.f32.mrb[16].mxu1 }
 0xf20   :  { %v1562_v25 = vrot.slane %v1557_v23, 2  ;;  %v2079_v27 = vpop.f32.mrb[17].mxu0  ;;  %v2090_v28 = vpop.f32.mrb[17].mxu1  ;;  %v1638_v36 = vadd.f32 %v2618_v52, %v1637_v24 }
 0xf22   :  { %v1564_v30 = vadd.f32 %v1562_v25, %v2608_v39  ;;  %v1642_v38 = vrot.slane %v1638_v36, 2  ;;  %v1660_v39 = vld [vmem:[#allocation8 + $0x18] sm:$0xff] }
 0xf23   :  { %v2218_v49 = vpack.c.bf16 %v1660_v39, %v1659_v47 }
 0xf24   :  { %v1792_v31 = vmul.f32 -1.442695, %v1564_v30 }
 0xf25   :  { %2219 = vmatpush3.bf16.msra.mxu0 %v2218_v49 }
 0xf26   :  { %2276 = vpow2.f32 %v1792_v31 }
 0xf30   :  { %v2277_v32 = vpop.eup %2276 }
 0xf31   :  { %v1568_v35 = vadd.f32 1.0, %v2277_v32 }
 0xf33   :  { %2278 = vrcp.f32 %v1568_v35 }
 0xf3d   :  { %v2279_v41 = vpop.eup %2278 }
 0xf3e   :  { %v1644_v42 = vmul.f32 %v2279_v41, %v1642_v38  ;;  %v1655_v44 = vmul.f32 %v2279_v41, %v1653_v37  ;;  %v1647_v52 = vsub.f32 1.0, %v2279_v41 }
 0xf40   :  { %v1645_v21 = vadd.f32 %v1644_v42, %v2610_v40 }
 0xf42   :  { %2280 = vtanh.f32 %v1645_v21 }
 0xf4c   :  { %v2281_v50 = vpop.eup %2280 }
 0xf4d   :  { %1649 = vrot.lane.b32.xlu0 %v2281_v50, %s2410_s13 }
 0xfbf   :  { %v1650_v51 = vpop.permute.xlu0 %1649 }
 0xfc0   :  { %v1652_v53 = vmul.f32 %v1650_v51, %v1647_v52 }
 0xfc2   :  { %v1656_v54 = vadd.f32 %v1655_v44, %v1652_v53 }
 0xfc4   :  { %v1669_v56 = vrot.slane %v1656_v54, 6 }
 0xfc6   :  { %1670 = vrot.lane.b32.xlu1 %v1669_v56, %s2411_s7 }
0x1038   :  { %v1671_v40 = vpop.permute.xlu1 %1670 }
0x1039   :  { %2100 = vmatmul.mubr.msk.f32.vlgmr.msra.gmra.mrb[18].mxu0 %vm118_vm0, %v1671_v40 }
0x110c   :  { %v1740_v15 = vpop.f32.mrb[18].mxu0 }
0x110d   :  { %v1741_v58 = vadd.f32 %v1794_v57, %v1740_v15  ;;  %v2101_v59 = vpop.f32.mrb[19].mxu0 }
0x110f   :  { %1745 = vst.msk [vmem:[#allocation10] sm:$0x3] %vm1744_vm4, %v1741_v58 }
0x1110   :  { %2381 = shalt.err (!%p2378_p8)
}
0x1111   :  { %s2382_s3 = scalar_lea.hbm %s2775_s10, 32 }
0x1112   :  { %p2383_p9 = scmp.ne.s32.totalorder %s2775_s10, %s2382_s3  ;;  %p2386_p10 = scmp.lt.u32.totalorder %s2382_s3, %s2775_s10 }
0x1114   :  { %p2388_p11 = pnand %p2386_p10, %p2383_p9 }
0x1116   :  { %2391 = shalt.err (!%p2388_p11)
}
0x1117   :  { %1755 = dma.vmem_to_hbm [thread:$0]  %s1753_s2, 32, %s2775_s10, [#allocation4]  }
0x1118   :  { %2398 = dma.done.wait [#allocation4], 32  }
0x1119   :  { %2399 = vsyncadd [#allocation4], 4294967264 }
0x111a   :  { %1759 = vsyncpa [#allocation3], 1 }
0x111b   :  { %1760 = vsyncpa [#allocation6], 1 }
0x111c   :  { %1761 = vsyncpa [#allocation9], 1 }
0x111d   :  { %1762 = vsyncpa [#allocation4], 1 }

</bundles_post_ra>
